<compile_context>
chip_gen: v7x
topology: tpu7x:2x2x1
jax: 0.10.0
libtpu: 0.0.40
codegen_flags: <defaults>
</compile_context>

<pallas_src>
import functools

import jax
import jax.numpy as jnp
from jax.experimental import pallas as pl
from jax.experimental.pallas import tpu as pltpu

_MiB = 1024 * 1024


# ----------------------------------------------------------------------------
# Hardware / budget helpers
# ----------------------------------------------------------------------------
def _vmem_capacity_bytes():
    """Per-core VMEM capacity; conservative 64 MiB (v7x) if unknown."""
    try:
        info = pltpu.get_tpu_info()
        cap = int(getattr(info, "vmem_capacity_bytes", 0) or 0)
        if cap > 0:
            return cap
    except Exception:
        pass
    return 64 * _MiB


def _pick_batch_tile(B, slab_bytes, block_budget_bytes):
    """Largest bt dividing B whose (bt, C, HW) block fits the budget while the
    grid stays as deep as possible.  Even grid >= 4 preferred: the 'parallel'
    batch axis is sharded across 2 TensorCores on v7x, so an even grid >= 4
    gives every core >= 2 steps of DMA/compute overlap."""
    fitting = [d for d in range(1, B + 1)
               if B % d == 0 and d * slab_bytes <= block_budget_bytes]
    if not fitting:
        return None
    for good_grid in (lambda g: g >= 4 and g % 2 == 0,
                      lambda g: g >= 4,
                      lambda g: g >= 2 and g % 2 == 0,
                      lambda g: g >= 2):
        cands = [d for d in fitting if good_grid(B // d)]
        if cands:
            return max(cands)
    return max(fitting)


def _pick_channel_tile(C, HW, itemsize, block_budget_bytes):
    """Largest ct (multiple of 8, divisor of C) with ct*HW*itemsize <= budget."""
    best = None
    for ct in range(8, C + 1, 8):
        if ct * HW * itemsize > block_budget_bytes:
            break
        if C % ct == 0:
            best = ct
    return best


# ----------------------------------------------------------------------------
# Kernels
# ----------------------------------------------------------------------------
def _se_fused_kernel(x_ref, w1t_ref, w2t_ref, o_ref):
    # x_ref:   (bt, C, HW)  -- lane axis = HW, sublane axis = C
    # w1t_ref: (C, hid)     -- pre-transposed fc1 weight (no in-kernel .T)
    # w2t_ref: (hid, C)     -- pre-transposed fc2 weight (no in-kernel .T)
    x = x_ref[...]
    # squeeze: global average pool over the spatial (lane) axis
    pooled = jnp.mean(x.astype(jnp.float32), axis=-1)                  # (bt, C)
    # excitation: fc1 -> ReLU -> fc2 -> sigmoid (tiny vs. the DMA traffic)
    h = jnp.dot(pooled, w1t_ref[...], preferred_element_type=jnp.float32)
    h = jnp.maximum(h, 0.0)                                            # (bt, hid)
    s = jnp.dot(h, w2t_ref[...], preferred_element_type=jnp.float32)
    s = jax.nn.sigmoid(s)                                              # (bt, C)
    # scale: per-channel reweighting, broadcast over the lane axis
    o_ref[...] = (x * s[:, :, None]).astype(o_ref.dtype)


def _pool_kernel(x_ref, pooled_ref):
    # x_ref: (1, ct, HW) -> pooled_ref: (1, ct, 1); channel tiles independent.
    pooled_ref[...] = jnp.mean(x_ref[...].astype(jnp.float32),
                               axis=-1, keepdims=True)


def _scale_kernel(x_ref, s_ref, o_ref):
    # x_ref: (1, ct, HW); s_ref: (1, ct, 1)
    o_ref[...] = (x_ref[...] * s_ref[...]).astype(o_ref.dtype)


# ----------------------------------------------------------------------------
# Wrappers
# ----------------------------------------------------------------------------
@functools.partial(jax.jit,
                   static_argnames=("bt", "vmem_limit_bytes", "donate_x"))
def _se_fused(x, w1, w2, *, bt, vmem_limit_bytes, donate_x=False):
    B, C, H, W = x.shape
    HW = H * W
    hid = w1.shape[0]
    itemsize = jnp.dtype(x.dtype).itemsize

    x_flat = x.reshape(B, C, HW)
    w1t = jnp.transpose(w1)          # (C, hid) -- transposed once, outside grid
    w2t = jnp.transpose(w2)          # (hid, C)

    cost = pl.CostEstimate(
        flops=4 * B * C * hid + 2 * B * C * HW,        # two matmuls + pool/scale
        transcendentals=B * C,                         # sigmoid
        bytes_accessed=(2 * B * C * HW * itemsize
                        + 2 * C * hid * jnp.dtype(w1.dtype).itemsize),
    )
    alias = {0: 0} if donate_x else {}

    out_flat = pl.pallas_call(
        _se_fused_kernel,
        out_shape=jax.ShapeDtypeStruct((B, C, HW), x.dtype),
        grid_spec=pltpu.PrefetchScalarGridSpec(
            num_scalar_prefetch=0,
            grid=(B // bt,),
            in_specs=[
                pl.BlockSpec((bt, C, HW), lambda b: (b, 0, 0)),
                pl.BlockSpec((C, hid), lambda b: (0, 0)),
                pl.BlockSpec((hid, C), lambda b: (0, 0)),
            ],
            out_specs=pl.BlockSpec((bt, C, HW), lambda b: (b, 0, 0)),
        ),
        compiler_params=pltpu.CompilerParams(
            dimension_semantics=("parallel",),
            vmem_limit_bytes=vmem_limit_bytes,
        ),
        cost_estimate=cost,
        input_output_aliases=alias,
    )(x_flat, w1t, w2t)
    return out_flat.reshape(B, C, H, W)


@functools.partial(jax.jit, static_argnames=("ct", "vmem_limit_bytes"))
def _se_two_pass(x, w1, w2, *, ct, vmem_limit_bytes):
    """Fallback for huge (C, H*W) slabs: channel-tiled pool + scale kernels."""
    B, C, H, W = x.shape
    HW = H * W
    x_flat = x.reshape(B, C, HW)

    grid = (B, C // ct)
    cparams = pltpu.CompilerParams(
        dimension_semantics=("parallel", "parallel"),
        vmem_limit_bytes=vmem_limit_bytes,
    )

    # Pass 1: per-(batch, channel-tile) global average pool.
    pooled = pl.pallas_call(
        _pool_kernel,
        out_shape=jax.ShapeDtypeStruct((B, C, 1), jnp.float32),
        grid_spec=pltpu.PrefetchScalarGridSpec(
            num_scalar_prefetch=0,
            grid=grid,
            in_specs=[pl.BlockSpec((1, ct, HW), lambda b, c: (b, c, 0))],
            out_specs=pl.BlockSpec((1, ct, 1), lambda b, c: (b, c, 0)),
        ),
        compiler_params=cparams,
    )(x_flat)

    # Tiny excitation (B, C) -> (B, C): plain XLA, negligible next to x traffic.
    p = pooled.reshape(B, C)
    h = jnp.maximum(p @ jnp.transpose(w1).astype(jnp.float32), 0.0)
    s = jax.nn.sigmoid(h @ jnp.transpose(w2).astype(jnp.float32))
    s = s.reshape(B, C, 1)

    # Pass 2: channel-wise rescale of x.
    out_flat = pl.pallas_call(
        _scale_kernel,
        out_shape=jax.ShapeDtypeStruct((B, C, HW), x.dtype),
        grid_spec=pltpu.PrefetchScalarGridSpec(
            num_scalar_prefetch=0,
            grid=grid,
            in_specs=[
                pl.BlockSpec((1, ct, HW), lambda b, c: (b, c, 0)),
                pl.BlockSpec((1, ct, 1), lambda b, c: (b, c, 0)),
            ],
            out_specs=pl.BlockSpec((1, ct, HW), lambda b, c: (b, c, 0)),
        ),
        compiler_params=cparams,
    )(x_flat, s)
    return out_flat.reshape(B, C, H, W)


def se_block(x, w1, w2, *, donate_x=False):
    """SEBlock forward.  x: (B, C, H, W); w1: (C//r, C); w2: (C, C//r).
    Both fc layers are bias-free, matching the PyTorch module."""
    B, C, H, W = x.shape
    HW = H * W
    hid = w1.shape[0]
    itemsize = jnp.dtype(x.dtype).itemsize

    vmem_cap = _vmem_capacity_bytes()
    headroom = 16 * _MiB                      # weights + compiler scratch
    # Four live big blocks per step: double-buffered input + output.
    max_block = max(2 * _MiB, (vmem_cap - headroom) // 4)

    slab = C * HW * itemsize                  # one bt=1 input block
    block_budget = 4 * _MiB                   # ~85% of HBM roofline already
    if slab > block_budget:
        # Grow only as far as needed so the fused single pass still fits
        # (reaches ~28 MiB blocks on 128 MiB parts before falling back).
        block_budget = min(slab, max_block)

    bt = _pick_batch_tile(B, slab, block_budget) if slab <= max_block else None

    if bt is not None:
        w_bytes = 2 * C * hid * jnp.dtype(w1.dtype).itemsize
        need = 4 * bt * slab + 4 * w_bytes + 8 * _MiB
        vmem_limit = int(min(vmem_cap - 8 * _MiB, max(32 * _MiB, need)))
        return _se_fused(x, w1, w2, bt=bt, vmem_limit_bytes=vmem_limit,
                         donate_x=donate_x)

    # A single (1, C, H*W) slab overflows this generation's VMEM budget:
    # channel-tiled two-pass Pallas path (pool kernel + scale kernel).
    ct = _pick_channel_tile(C, HW, itemsize, 4 * _MiB)
    if ct is not None:
        block = ct * HW * itemsize
        vmem_limit = int(min(vmem_cap - 8 * _MiB,
                             max(32 * _MiB, 4 * block + 8 * _MiB)))
        return _se_two_pass(x, w1, w2, ct=ct, vmem_limit_bytes=vmem_limit)

    # TODO(synk): shapes where even a (1, 8, H*W) channel tile overflows VMEM
    # (H*W beyond ~128K f32 elements) fall back to plain XLA; still correct.
    return _reference(x, w1, w2)


def _reference(x, w1, w2):
    y = jnp.mean(x, axis=(2, 3))                  # (B, C)
    h = jnp.maximum(y @ w1.T, 0.0)                # (B, C//r)
    s = jax.nn.sigmoid(h @ w2.T)                  # (B, C)
    return x * s[:, :, None, None]


if __name__ == "__main__":
    # Small shapes consistent with SEBlock(channels=32, reduction=16)
    B, C, H, W = 2, 32, 16, 16
    reduction = 16
    hid = C // reduction

    key = jax.random.PRNGKey(0)
    kx, k1, k2 = jax.random.split(key, 3)
    x = jax.random.normal(kx, (B, C, H, W), dtype=jnp.float32)
    # Deterministic synthetic weights (PyTorch Linear layout: (out, in), bias=False)
    w1 = jax.random.normal(k1, (hid, C), dtype=jnp.float32) * 0.1
    w2 = jax.random.normal(k2, (C, hid), dtype=jnp.float32) * 0.1

    ref = _reference(x, w1, w2)

    # Primary fused single-pass path.
    out = se_block(x, w1, w2)
    jax.block_until_ready(out)
    assert out.shape == x.shape
    assert jnp.allclose(out, ref, atol=1e-5, rtol=1e-5), "fused path mismatch"

    # Also exercise the channel-tiled two-pass fallback path at small shape.
    out2 = _se_two_pass(x, w1, w2, ct=8, vmem_limit_bytes=32 * _MiB)
    jax.block_until_ready(out2)
    assert jnp.allclose(out2, ref, atol=1e-5, rtol=1e-5), "two-pass path mismatch"

    print("KERNEL_OK")
</pallas_src>

<mosaic_0001>
module attributes {stable_mosaic.version = 11 : i64} {
  func.func @_se_fused_kernel(%arg0: i32, %arg1: memref<1x32x256xf32, #tpu.memory_space<vmem>>, %arg2: memref<32x2xf32, #tpu.memory_space<vmem>>, %arg3: memref<2x32xf32, #tpu.memory_space<vmem>>, %arg4: memref<1x32x256xf32, #tpu.memory_space<vmem>>) attributes {dimension_semantics = [#tpu.dimension_semantics<parallel>], iteration_bounds = array<i64: 2>, scalar_prefetch = 0 : i64, scratch_operands = 0 : i64, tpu.core_type = #tpu.core_type<tc>, window_params = [{transform_indices = @transform_0, window_bounds = array<i64: 1, 32, 256>}, {pipeline_mode = #tpu.pipeline_mode<synchronous>, transform_indices = @transform_1, window_bounds = array<i64: 32, 2>}, {pipeline_mode = #tpu.pipeline_mode<synchronous>, transform_indices = @transform_2, window_bounds = array<i64: 2, 32>}, {transform_indices = @transform_3, window_bounds = array<i64: 1, 32, 256>}]} {
    %c0 = arith.constant 0 : index
    %c0_0 = arith.constant 0 : index
    %c0_1 = arith.constant 0 : index
    %0 = vector.load %arg1[%c0, %c0_0, %c0_1] : memref<1x32x256xf32, #tpu.memory_space<vmem>>, vector<1x32x256xf32>
    %cst = arith.constant dense<0.000000e+00> : vector<1x32xf32>
    %1 = vector.multi_reduction <add>, %0, %cst [2] : vector<1x32x256xf32> to vector<1x32xf32>
    %cst_2 = arith.constant 2.560000e+02 : f32
    %2 = vector.broadcast %cst_2 : f32 to vector<1x32xf32>
    %3 = arith.divf %1, %2 : vector<1x32xf32>
    %c0_3 = arith.constant 0 : index
    %c0_4 = arith.constant 0 : index
    %4 = vector.load %arg2[%c0_3, %c0_4] : memref<32x2xf32, #tpu.memory_space<vmem>>, vector<32x2xf32>
    %cst_5 = arith.constant dense<0.000000e+00> : vector<1x2xf32>
    %5 = tpu.matmul %3, %4, %cst_5 {dimension_numbers = #tpu.dot_dimension_numbers<[1], [0], [0], [1], [0, 0, 1, 1], [], []>} : vector<1x32xf32>, vector<32x2xf32>, vector<1x2xf32> -> vector<1x2xf32>
    %cst_6 = arith.constant 0.000000e+00 : f32
    %6 = vector.broadcast %cst_6 : f32 to vector<1x2xf32>
    %7 = arith.maximumf %5, %6 : vector<1x2xf32>
    %c0_7 = arith.constant 0 : index
    %c0_8 = arith.constant 0 : index
    %8 = vector.load %arg3[%c0_7, %c0_8] : memref<2x32xf32, #tpu.memory_space<vmem>>, vector<2x32xf32>
    %cst_9 = arith.constant dense<0.000000e+00> : vector<1x32xf32>
    %9 = tpu.matmul %7, %8, %cst_9 {dimension_numbers = #tpu.dot_dimension_numbers<[1], [0], [0], [1], [0, 0, 1, 1], [], []>} : vector<1x2xf32>, vector<2x32xf32>, vector<1x32xf32> -> vector<1x32xf32>
    %10 = arith.negf %9 : vector<1x32xf32>
    %11 = math.exp %10 : vector<1x32xf32>
    %cst_10 = arith.constant 1.000000e+00 : f32
    %12 = vector.broadcast %cst_10 : f32 to vector<1x32xf32>
    %13 = arith.addf %12, %11 : vector<1x32xf32>
    %14 = arith.divf %12, %13 : vector<1x32xf32>
    %15 = vector.shape_cast %14 : vector<1x32xf32> to vector<1x32x1xf32>
    %16 = vector.broadcast %15 : vector<1x32x1xf32> to vector<1x32x256xf32>
    %17 = arith.mulf %0, %16 : vector<1x32x256xf32>
    %c0_11 = arith.constant 0 : index
    %c0_12 = arith.constant 0 : index
    %c0_13 = arith.constant 0 : index
    %18 = vector.load %arg4[%c0_11, %c0_12, %c0_13] : memref<1x32x256xf32, #tpu.memory_space<vmem>>, vector<1x32x256xf32>
    tpu.vector_store %arg4[%c0_11, %c0_12, %c0_13], %17 {strides = array<i32>} : memref<1x32x256xf32, #tpu.memory_space<vmem>>, vector<1x32x256xf32>,
    return
  }
  func.func @transform_0(%arg0: i32) -> (i32, i32, i32) {
    %c0_i32 = arith.constant 0 : i32
    %c0_i32_0 = arith.constant 0 : i32
    %c0_i32_1 = arith.constant 0 : i32
    return %arg0, %c0_i32, %c0_i32_0 : i32, i32, i32
  }
  func.func @transform_1(%arg0: i32) -> (i32, i32) {
    %c0_i32 = arith.constant 0 : i32
    %c0_i32_0 = arith.constant 0 : i32
    %c0_i32_1 = arith.constant 0 : i32
    return %c0_i32, %c0_i32_0 : i32, i32
  }
  func.func @transform_2(%arg0: i32) -> (i32, i32) {
    %c0_i32 = arith.constant 0 : i32
    %c0_i32_0 = arith.constant 0 : i32
    %c0_i32_1 = arith.constant 0 : i32
    return %c0_i32, %c0_i32_0 : i32, i32
  }
  func.func @transform_3(%arg0: i32) -> (i32, i32, i32) {
    %c0_i32 = arith.constant 0 : i32
    %c0_i32_0 = arith.constant 0 : i32
    %c0_i32_1 = arith.constant 0 : i32
    return %arg0, %c0_i32, %c0_i32_0 : i32, i32, i32
  }
}

</mosaic_0001>

<bundles_post_ra>
// kernel: _se_fused.1
= control target key start
LH: loop header
LB: loop body
LE: loop exit
PB: predicated region body
PF: predicated region fallthrough
CT: control target
= control target key end

     0   :  { %s572_s12 = smov 0   ;;  %s643_s0 = inlined_call_operand.vmem [shape: f32[2,32,256], index: 0, kind: input, shape index: {}]   ;;  %s644_s1 = inlined_call_operand.vmem [shape: f32[32,2], index: 1, kind: input, shape index: {}]   ;;  %s645_s2 = inlined_call_operand.vmem [shape: f32[2,32], index: 2, kind: input, shape index: {}]   ;;  %s646_s3 = inlined_call_operand.vmem [shape: f32[2,32,256], index: 3, kind: output, shape index: {}]  }
   0x1 LB: > { %s480_s13 = sadd.s32 4294967295, %s547_s12   ;;  %p484_p0 = scmp.ge.s32.totalorder %s547_s12, 1  ;;  %s547_s12 = sphi %s572_s12, %s13_s12  }
   0x2   : > { %p137_p1 = scmp.lt.s32.totalorder %s547_s12, 3 }
   0x4   : > { %p138_p2 = pnand %p484_p0, %p137_p1 }
   0x5   : > { %p161_p3 = scmp.lt.s32.totalorder (!%p138_p2), %s480_s13, 1  ;;  %v196_v12 = vld [vmem:[%s644_s1] sm:$0xff] (!%p138_p2)  ;;  %v197_v13 = vld [vmem:[%s644_s1 + $0x8] sm:$0xff] (!%p138_p2)  ;;  %v549_v15 = vmov (!%p138_p2), 0.0|0.0   ;;  %v198_v16 = vld [vmem:[%s644_s1 + $0x10] sm:$0xff] (!%p138_p2)  ;;  %vm550_vm0 = vmmov (!%p138_p2), 0   ;;  %v204_v20 = vlaneseq (!%p138_p2) }
   0x6   : > { %141 = sbr.rel (%p138_p2) target bundleno = 752 (0x2f0), region = 32  ;;  %v521_v14 = vpack.c.bf16 (!%p138_p2), %v197_v13, %v196_v12  ;;  %520 = vmatprep.subr.bf16.mxu0 (!%p138_p2), %v549_v15  ;;  %v199_v17 = vld [vmem:[%s644_s1 + $0x18] sm:$0xff] (!%p138_p2)  ;;  %v551_v19 = vmov (!%p138_p2), 0.0   ;;  %vm215_vm1 = vcmask (!%p138_p2), 130112   ;;  %vm222_vm2 = vcmask (!%p138_p2), 195712  }
   0x7   : > { %v524_v18 = vpack.c.bf16 (!%p138_p2), %v199_v17, %v198_v16  ;;  %512 = vmatprep.mubr.msk.f32.mxu0 (!%p138_p2), %vm550_vm0, %v551_v19  ;;  %515 = vmatprep.subr.mxu1 (!%p138_p2), %v551_v19  ;;  %v205_v21 = vand.u32 (!%p138_p2), 127, %v204_v20  ;;  %v207_v22 = vshrl.u32 (!%p138_p2), %v204_v20, 7  ;;  %vm229_vm3 = vcmask (!%p138_p2), 261312   ;;  %v305_v45 = vld [vmem:[%s645_s2] sm:$0x3] (!%p138_p2) }
   0x8   : > { %522 = vmatpush3.bf16.msra.mxu0 (!%p138_p2), %v521_v14  ;;  %517 = vmatprep.mubr.msk.f32.mxu1 (!%p138_p2), %vm550_vm0, %v551_v19  ;;  %vm231_vm4 = vcmask (!%p138_p2), 261120   ;;  %vm310_vm5 = vcmask (!%p138_p2), 1041408   ;;  %vm306_vm6 = vcmask (!%p138_p2), 15360  }
   0x9   : > { %523 = vmatprep.subr.bf16.mxu0 (!%p138_p2), %v549_v15  ;;  %v210_v23 = vadd.s32 (!%p138_p2), 4294967288, %v205_v21  ;;  %v217_v25 = vadd.s32 (!%p138_p2), 4294967280, %v205_v21  ;;  %v224_v26 = vadd.s32 (!%p138_p2), 4294967272, %v205_v21  ;;  %v208_v28 = vsub.s32 (!%p138_p2), %v205_v21, %v207_v22  ;;  %516 = vmatpush3.msk.msra.mxu1 (!%p138_p2), %vm310_vm5, %v305_v45 }
   0xa   : > { %v392_v54 = vsub.s32 (!%p138_p2), 0, %v207_v22 }
   0xb   : > { %v213_v30 = vsub.s32 (!%p138_p2), %v210_v23, %v207_v22  ;;  %v220_v31 = vsub.s32 (!%p138_p2), %v217_v25, %v207_v22  ;;  %v227_v34 = vsub.s32 (!%p138_p2), %v224_v26, %v207_v22 }
   0xc   : > { %525 = vmatpush3.bf16.msra.mxu0 (!%p138_p2), %v524_v18 }
   0xd   : > { %s648_s13 = smov (!%p161_p3, %s480_s13), 1 }
   0xe   : > { %s495_s14 = sshll.u32 %s648_s13, 6 }
   0xf   : > { %s165_s17 = scalar_lea.vmem %s643_s0, %s495_s14  ;;  %s170_s30 = scalar_lea.vmem %s646_s3, %s495_s14 }
  0x10   : > { %v588_v0 = vld [vmem:[%s165_s17] sm:$0xff]  ;;  %v590_v1 = vld [vmem:[%s165_s17 + $0x8] sm:$0xff]  ;;  %v598_v5 = vld [vmem:[%s165_s17 + $0x10] sm:$0xff] }
  0x11   : > { %v592_v2 = vld [vmem:[%s165_s17 + $0x20] sm:$0xff]  ;;  %v179_v3 = vadd.f32 %v590_v1, %v588_v0  ;;  %v596_v4 = vld [vmem:[%s165_s17 + $0x28] sm:$0xff]  ;;  %v600_v6 = vld [vmem:[%s165_s17 + $0x18] sm:$0xff] }
  0x12   : > { %v185_v7 = vadd.f32 %v596_v4, %v592_v2  ;;  %v604_v8 = vld [vmem:[%s165_s17 + $0x30] sm:$0xff]  ;;  %v606_v9 = vld [vmem:[%s165_s17 + $0x38] sm:$0xff]  ;;  %v182_v10 = vadd.f32 %v600_v6, %v598_v5 }
  0x13   : > { %180 = vadd.xlane.f32.xlu0 %v179_v3  ;;  %v188_v11 = vadd.f32 %v606_v9, %v604_v8 }
  0x14   : > { %186 = vadd.xlane.f32.xlu1 %v185_v7 }
  0x17   : > { %183 = vadd.xlane.f32.xlu0 %v182_v10 }
  0x18   : > { %189 = vadd.xlane.f32.xlu1 %v188_v11 }
  0xa0   : > { %v181_v24 = vpop.xlane.xlu0 %180 }
  0xa1   : > { %v187_v27 = vpop.xlane.xlu1 %186  ;;  %v192_v29 = vmul.f32 0.00390625, %v181_v24 }
  0xa2   : > { %v194_v32 = vmul.f32 0.00390625, %v187_v27 }
  0xa3   : > { %v209_v38 = vrot.slane %v192_v29, %v208_v28 }
  0xa4   : > { %v184_v33 = vpop.xlane.xlu0 %183  ;;  %v221_v40 = vrot.slane %v194_v32, %v220_v31 }
  0xa5   : > { %v193_v35 = vmul.f32 0.00390625, %v184_v33  ;;  %v190_v36 = vpop.xlane.xlu1 %189 }
  0xa6   : > { %v195_v37 = vmul.f32 0.00390625, %v190_v36 }
  0xa7   : > { %v214_v39 = vrot.slane %v193_v35, %v213_v30 }
  0xa8   : > { %v228_v41 = vrot.slane %v195_v37, %v227_v34 }
  0xa9   : > { %v216_v42 = vsel %vm215_vm1, %v214_v39, %v209_v38 }
  0xaa   : > { %v223_v43 = vsel %vm222_vm2, %v221_v40, %v216_v42 }
  0xab   : > { %v230_v44 = vsel %vm229_vm3, %v228_v41, %v223_v43 }
  0xac   : > { %513 = vmatmul.mubr.msk.f32.vlgmr.msra.gmra.mrb[0].mxu0 %vm231_vm4, %v230_v44 }
 0x17f   : > { %v300_v46 = vpop.f32.mrb[0].mxu0 }
 0x180   : > { %v304_v47 = vmax.f32 %v300_v46, 0.0  ;;  %v514_v48 = vpop.f32.mrb[1].mxu0 }
 0x182   : > { %518 = vmatmul.mubr.msk.f32.vlgmr.msra.gmra.mrb[0].mxu1 %vm306_vm6, %v304_v47 }
 0x255   : > { %v380_v49 = vpop.f32.mrb[0].mxu1 }
 0x256   : > { %v492_v50 = vmul.f32 -1.442695, %v380_v49  ;;  %v519_v51 = vpop.f32.mrb[1].mxu1 }
 0x258   : > { %537 = vpow2.f32 %v492_v50 }
 0x262   : > { %v538_v52 = vpop.eup %537 }
 0x263   : > { %v387_v53 = vadd.f32 1.0, %v538_v52 }
 0x265   : > { %539 = vrcp.f32 %v387_v53 }
 0x26f   : > { %v540_v55 = vpop.eup %539 }
 0x270   : > { %v393_v56 = vrot.slane %v540_v55, %v392_v54 }
 0x272   : > { %399 = vbcast.lane.b32.xlu1 %v393_v56, 264  ;;  %395 = vbcast.lane.b32.xlu0 %v393_v56, 256 }
 0x276   : > { %403 = vbcast.lane.b32.xlu1 %v393_v56, 272 }
 0x27a   : > { %407 = vbcast.lane.b32.xlu1 %v393_v56, 280 }
 0x2e4   : > { %v400_v57 = vpop.permute.xlu1 %399  ;;  %v396_v58 = vpop.permute.xlu0 %395 }
 0x2e5   : > { %v411_v59 = vmul.f32 %v400_v57, %v598_v5  ;;  %v412_v60 = vmul.f32 %v400_v57, %v600_v6  ;;  %v409_v61 = vmul.f32 %v396_v58, %v588_v0  ;;  %v410_v62 = vmul.f32 %v396_v58, %v590_v1 }
 0x2e7   : > { %419 = vst [vmem:[%s170_s30 + $0x10] sm:$0xff] %v411_v59  ;;  %420 = vst [vmem:[%s170_s30 + $0x18] sm:$0xff] %v412_v60 }
 0x2e8   : > { %417 = vst [vmem:[%s170_s30] sm:$0xff] %v409_v61  ;;  %418 = vst [vmem:[%s170_s30 + $0x8] sm:$0xff] %v410_v62  ;;  %v404_v63 = vpop.permute.xlu1 %403 }
 0x2e9   : > { %v413_v3 = vmul.f32 %v404_v63, %v592_v2  ;;  %v414_v7 = vmul.f32 %v404_v63, %v596_v4 }
 0x2eb   : > { %421 = vst [vmem:[%s170_s30 + $0x20] sm:$0xff] %v413_v3  ;;  %422 = vst [vmem:[%s170_s30 + $0x28] sm:$0xff] %v414_v7 }
 0x2ec   : > { %v408_v10 = vpop.permute.xlu1 %407 }
 0x2ed   : > { %v415_v5 = vmul.f32 %v408_v10, %v604_v8  ;;  %v416_v6 = vmul.f32 %v408_v10, %v606_v9 }
 0x2ef   : > { %423 = vst [vmem:[%s170_s30 + $0x30] sm:$0xff] %v415_v5  ;;  %424 = vst [vmem:[%s170_s30 + $0x38] sm:$0xff] %v416_v6 }
 0x2f0 PF: > { %s13_s12 = sadd.s32 1, %s547_s12  }
 0x2f1   : > { %p10_p4 = scmp.ge.s32.totalorder %s13_s12, 4  }
 0x2f3   :  { %12 = sbr.rel (!%p10_p4) target bundleno = 1 (0x1), region = 62 }

</bundles_post_ra>
